<compile_context>
chip_gen: v7x
topology: tpu7x:2x2x1
jax: 0.10.0
libtpu: 0.0.40
codegen_flags: <defaults>
</compile_context>

<pallas_src>
import jax
import jax.numpy as jnp
from jax.experimental import pallas as pl
from jax.experimental.pallas import tpu as pltpu


# --------------------------------------------------------------------------- #
# Kernel
# --------------------------------------------------------------------------- #
def _head_kernel(x_ref, w1_ref, b1_ref, w2_ref, b2_ref, o_ref, h_acc):
    # x_ref:  (tm, tk)  native-dtype tile of flattened hidden states
    # w1_ref: (tk, D)   bf16 K-slice of dense weight
    # b1_ref: (1, D)    f32 dense bias
    # w2_ref: (D, Np)   bf16 out_proj weight, lane-padded (resident)
    # b2_ref: (1, Np)   f32 out_proj bias, lane-padded (resident)
    # o_ref:  (tm, Np)  logits tile (written on the last K step only)
    # h_acc:  (tm, D)   f32 accumulator scratch
    k = pl.program_id(1)

    @pl.when(k == 0)
    def _():
        h_acc[...] = jnp.zeros_like(h_acc)

    # In-kernel bf16 cast of activations; f32 accumulation on the MXU.
    h_acc[...] += jnp.dot(x_ref[...].astype(jnp.bfloat16), w1_ref[...],
                          preferred_element_type=jnp.float32)

    @pl.when(k == pl.num_programs(1) - 1)
    def _():
        h = jnp.tanh(h_acc[...] + b1_ref[...])
        out = jnp.dot(h.astype(w2_ref.dtype), w2_ref[...],
                      preferred_element_type=jnp.float32)
        o_ref[...] = (out + b2_ref[...]).astype(o_ref.dtype)


# --------------------------------------------------------------------------- #
# Helpers
# --------------------------------------------------------------------------- #
def _round_up(x, m):
    return ((x + m - 1) // m) * m


def _largest_dividing_tile(n, candidates):
    for c in candidates:
        if n % c == 0:
            return c
    return candidates[-1]


def _vmem_capacity_bytes():
    """Physical per-core VMEM; conservative 64 MiB (v7x) fallback."""
    if hasattr(pltpu, "get_tpu_info"):
        try:
            cap = getattr(pltpu.get_tpu_info(), "vmem_capacity_bytes", None)
            if cap:
                return int(cap)
        except Exception:  # probe only; never masks kernel/compile errors
            pass
    return 64 << 20


# --------------------------------------------------------------------------- #
# Parameter preparation (one-time cast / pad; cache the result)
# --------------------------------------------------------------------------- #
def prepare_params(w_dense, b_dense, w_out, b_out):
    """Cast weights to bf16, biases to f32, lane-pad out_proj. Call once."""
    D = w_dense.shape[0]
    N = w_out.shape[1]
    Np = _round_up(N, 128)
    w1 = w_dense.astype(jnp.bfloat16)                  # (D, D)
    b1 = b_dense.reshape(1, D).astype(jnp.float32)     # (1, D)
    w2 = w_out.astype(jnp.bfloat16)                    # (D, N)
    b2 = b_out.reshape(1, N).astype(jnp.float32)       # (1, N)
    if Np != N:
        w2 = jnp.pad(w2, ((0, 0), (0, Np - N)))
        b2 = jnp.pad(b2, ((0, 0), (0, Np - N)))
    return {"w1": w1, "b1": b1, "w2": w2, "b2": b2, "num_labels": N}


# --------------------------------------------------------------------------- #
# Forward pass
# --------------------------------------------------------------------------- #
def flash_t5_classification_head(hidden_states, params):
    """hidden_states: [B, S, D]; returns logits [B, S, num_labels]."""
    B, S, D = hidden_states.shape
    w1, b1, w2, b2 = params["w1"], params["b1"], params["w2"], params["b2"]
    N = params["num_labels"]
    Np = w2.shape[1]
    M = B * S
    out_dtype = hidden_states.dtype
    x_itemsize = jnp.dtype(hidden_states.dtype).itemsize
    out_itemsize = jnp.dtype(out_dtype).itemsize

    # Row tiling: pad rows to a multiple of 128, pick the largest tile in
    # {512, 256, 128} that divides the padded row count.
    Mp = _round_up(M, 128)
    tm = _largest_dividing_tile(Mp, (512, 256, 128))
    # Keep >= 2 steps on the parallel row axis when possible (v7x: 2 TCs).
    if Mp // tm == 1 and tm > 128:
        tm //= 2

    # K tiling of the first matmul (overlaps W_dense DMA with compute).
    if D % 128 == 0:
        tk = _largest_dividing_tile(D, (512, 256, 128))
    else:
        tk = D  # small d_model: single full-width K step
    Kn = D // tk

    x2d = hidden_states.reshape(M, D)
    if Mp != M:
        x2d = jnp.pad(x2d, ((0, Mp - M), (0, 0)))

    # VMEM budget: double-buffered pipelined tiles + f32 accumulator scratch +
    # in-kernel temporaries + resident (double-buffered) out_proj operands.
    need = (2 * tm * tk * x_itemsize           # x tiles
            + 2 * tk * D * 2                   # W_dense tiles (bf16)
            + 2 * tm * Np * out_itemsize       # output tiles
            + tm * D * 4                       # h accumulator scratch (f32)
            + tm * D * 2 + tm * Np * 4         # in-kernel temporaries
            + 2 * (D * Np * 2 + D * 4 + Np * 4))  # resident W_out / biases
    capacity = _vmem_capacity_bytes()
    vmem_limit = int(min(capacity - (4 << 20),
                         max(32 << 20, need + (4 << 20))))

    out2d = pl.pallas_call(
        _head_kernel,
        out_shape=jax.ShapeDtypeStruct((Mp, Np), out_dtype),
        grid_spec=pltpu.PrefetchScalarGridSpec(
            num_scalar_prefetch=0,
            grid=(Mp // tm, Kn),                              # K innermost
            in_specs=[
                pl.BlockSpec((tm, tk), lambda i, k: (i, k)),  # x
                pl.BlockSpec((tk, D), lambda i, k: (k, 0)),   # W_dense (streamed)
                pl.BlockSpec((1, D), lambda i, k: (0, 0)),    # b_dense
                pl.BlockSpec((D, Np), lambda i, k: (0, 0)),   # W_out (resident)
                pl.BlockSpec((1, Np), lambda i, k: (0, 0)),   # b_out
            ],
            out_specs=pl.BlockSpec((tm, Np), lambda i, k: (i, 0)),
            scratch_shapes=[pltpu.VMEM((tm, D), jnp.float32)],
        ),
        compiler_params=pltpu.CompilerParams(
            dimension_semantics=("parallel", "arbitrary"),
            vmem_limit_bytes=vmem_limit),
    )(x2d, w1, b1, w2, b2)

    return out2d[:M, :N].reshape(B, S, N)


# --------------------------------------------------------------------------- #
# Init matching the PyTorch module
# --------------------------------------------------------------------------- #
def init_params(key, d_model, num_labels, initializer_factor=1.0,
                dtype=jnp.float32):
    std = initializer_factor * d_model ** (-0.5)
    k1, k2 = jax.random.split(key)
    # Stored as (in, out) == transpose of PyTorch's (out, in); normal init is
    # transpose-invariant in distribution so std matches exactly.
    w_dense = (jax.random.normal(k1, (d_model, d_model)) * std).astype(dtype)
    b_dense = jnp.zeros((d_model,), dtype)
    w_out = (jax.random.normal(k2, (d_model, num_labels)) * std).astype(dtype)
    b_out = jnp.zeros((num_labels,), dtype)
    return w_dense, b_dense, w_out, b_out


if __name__ == "__main__":
    # Small shapes implied by the forward: [batch, seq, d_model] -> [batch, seq, num_labels]
    batch, seq, d_model, num_labels = 2, 8, 32, 4
    key = jax.random.PRNGKey(0)
    k_x, k_p = jax.random.split(key)

    hidden_states = jax.random.normal(k_x, (batch, seq, d_model), jnp.float32)
    w_dense, b_dense, w_out, b_out = init_params(k_p, d_model, num_labels)

    params = prepare_params(w_dense, b_dense, w_out, b_out)   # one-time cast/pad
    logits = flash_t5_classification_head(hidden_states, params)
    logits = jax.block_until_ready(logits)

    # Pure-JAX reference with the same bf16-operand / f32-accumulate precision
    # as the kernel (dropout is identity in eval mode).
    xb = hidden_states.astype(jnp.bfloat16).astype(jnp.float32)
    w1b = w_dense.astype(jnp.bfloat16).astype(jnp.float32)
    w2b = w_out.astype(jnp.bfloat16).astype(jnp.float32)
    h_ref = jnp.tanh(xb @ w1b + b_dense)
    ref = h_ref.astype(jnp.bfloat16).astype(jnp.float32) @ w2b + b_out

    assert logits.shape == (batch, seq, num_labels)
    assert jnp.allclose(logits, ref, atol=2e-2, rtol=2e-2), \
        float(jnp.max(jnp.abs(logits - ref)))

    print("KERNEL_OK")
</pallas_src>

<mosaic_0001>
module attributes {stable_mosaic.version = 11 : i64} {
  func.func @_head_kernel(%arg0: i32, %arg1: i32, %arg2: memref<128x32xf32, #tpu.memory_space<vmem>>, %arg3: memref<32x32xbf16, #tpu.memory_space<vmem>>, %arg4: memref<1x32xf32, #tpu.memory_space<vmem>>, %arg5: memref<32x128xbf16, #tpu.memory_space<vmem>>, %arg6: memref<1x128xf32, #tpu.memory_space<vmem>>, %arg7: memref<128x128xf32, #tpu.memory_space<vmem>>, %arg8: memref<128x32xf32, #tpu.memory_space<vmem>>) attributes {dimension_semantics = [#tpu.dimension_semantics<parallel>, #tpu.dimension_semantics<arbitrary>], iteration_bounds = array<i64: 1, 1>, scalar_prefetch = 0 : i64, scratch_operands = 1 : i64, tpu.core_type = #tpu.core_type<tc>, window_params = [{transform_indices = @transform_0, window_bounds = array<i64: 128, 32>}, {transform_indices = @transform_1, window_bounds = array<i64: 32, 32>}, {pipeline_mode = #tpu.pipeline_mode<synchronous>, transform_indices = @transform_2, window_bounds = array<i64: 1, 32>}, {pipeline_mode = #tpu.pipeline_mode<synchronous>, transform_indices = @transform_3, window_bounds = array<i64: 32, 128>}, {pipeline_mode = #tpu.pipeline_mode<synchronous>, transform_indices = @transform_4, window_bounds = array<i64: 1, 128>}, {transform_indices = @transform_5, window_bounds = array<i64: 128, 128>}]} {
    %c0_i32 = arith.constant 0 : i32
    %0 = arith.cmpi eq, %arg1, %c0_i32 : i32
    %1 = arith.extui %0 : i1 to i32
    %c0_i32_0 = arith.constant 0 : i32
    %2 = arith.cmpi ne, %1, %c0_i32_0 : i32
    scf.if %2 {
      %cst_10 = arith.constant 0.000000e+00 : f32
      %13 = vector.broadcast %cst_10 : f32 to vector<128x32xf32>
      %c0_11 = arith.constant 0 : index
      %c0_12 = arith.constant 0 : index
      %14 = vector.load %arg8[%c0_11, %c0_12] : memref<128x32xf32, #tpu.memory_space<vmem>>, vector<128x32xf32>
      tpu.vector_store %arg8[%c0_11, %c0_12], %13 {strides = array<i32>} : memref<128x32xf32, #tpu.memory_space<vmem>>, vector<128x32xf32>,
    } else {
    }
    %c0 = arith.constant 0 : index
    %c0_1 = arith.constant 0 : index
    %3 = vector.load %arg8[%c0, %c0_1] : memref<128x32xf32, #tpu.memory_space<vmem>>, vector<128x32xf32>
    %c0_2 = arith.constant 0 : index
    %c0_3 = arith.constant 0 : index
    %4 = vector.load %arg2[%c0_2, %c0_3] : memref<128x32xf32, #tpu.memory_space<vmem>>, vector<128x32xf32>
    %5 = arith.truncf %4 : vector<128x32xf32> to vector<128x32xbf16>
    %c0_4 = arith.constant 0 : index
    %c0_5 = arith.constant 0 : index
    %6 = vector.load %arg3[%c0_4, %c0_5] : memref<32x32xbf16, #tpu.memory_space<vmem>>, vector<32x32xbf16>
    %cst = arith.constant dense<0.000000e+00> : vector<128x32xf32>
    %7 = tpu.matmul %5, %6, %cst {dimension_numbers = #tpu.dot_dimension_numbers<[1], [0], [0], [1], [0, 0, 1, 1], [], []>} : vector<128x32xbf16>, vector<32x32xbf16>, vector<128x32xf32> -> vector<128x32xf32>
    %8 = arith.addf %3, %7 : vector<128x32xf32>
    %c0_6 = arith.constant 0 : index
    %c0_7 = arith.constant 0 : index
    %9 = vector.load %arg8[%c0_6, %c0_7] : memref<128x32xf32, #tpu.memory_space<vmem>>, vector<128x32xf32>
    tpu.vector_store %arg8[%c0_6, %c0_7], %8 {strides = array<i32>} : memref<128x32xf32, #tpu.memory_space<vmem>>, vector<128x32xf32>,
    %c0_i32_8 = arith.constant 0 : i32
    %10 = arith.cmpi eq, %arg1, %c0_i32_8 : i32
    %11 = arith.extui %10 : i1 to i32
    %c0_i32_9 = arith.constant 0 : i32
    %12 = arith.cmpi ne, %11, %c0_i32_9 : i32
    scf.if %12 {
      %c0_10 = arith.constant 0 : index
      %c0_11 = arith.constant 0 : index
      %13 = vector.load %arg8[%c0_10, %c0_11] : memref<128x32xf32, #tpu.memory_space<vmem>>, vector<128x32xf32>
      %c0_12 = arith.constant 0 : index
      %c0_13 = arith.constant 0 : index
      %14 = vector.load %arg4[%c0_12, %c0_13] : memref<1x32xf32, #tpu.memory_space<vmem>>, vector<1x32xf32>
      %15 = vector.broadcast %14 : vector<1x32xf32> to vector<128x32xf32>
      %16 = arith.addf %13, %15 : vector<128x32xf32>
      %17 = math.tanh %16 : vector<128x32xf32>
      %18 = arith.truncf %17 : vector<128x32xf32> to vector<128x32xbf16>
      %c0_14 = arith.constant 0 : index
      %c0_15 = arith.constant 0 : index
      %19 = vector.load %arg5[%c0_14, %c0_15] : memref<32x128xbf16, #tpu.memory_space<vmem>>, vector<32x128xbf16>
      %cst_16 = arith.constant dense<0.000000e+00> : vector<128x128xf32>
      %20 = tpu.matmul %18, %19, %cst_16 {dimension_numbers = #tpu.dot_dimension_numbers<[1], [0], [0], [1], [0, 0, 1, 1], [], []>} : vector<128x32xbf16>, vector<32x128xbf16>, vector<128x128xf32> -> vector<128x128xf32>
      %c0_17 = arith.constant 0 : index
      %c0_18 = arith.constant 0 : index
      %21 = vector.load %arg6[%c0_17, %c0_18] : memref<1x128xf32, #tpu.memory_space<vmem>>, vector<1x128xf32>
      %22 = vector.broadcast %21 : vector<1x128xf32> to vector<128x128xf32>
      %23 = arith.addf %20, %22 : vector<128x128xf32>
      %c0_19 = arith.constant 0 : index
      %c0_20 = arith.constant 0 : index
      %24 = vector.load %arg7[%c0_19, %c0_20] : memref<128x128xf32, #tpu.memory_space<vmem>>, vector<128x128xf32>
      tpu.vector_store %arg7[%c0_19, %c0_20], %23 {strides = array<i32>} : memref<128x128xf32, #tpu.memory_space<vmem>>, vector<128x128xf32>,
    } else {
    }
    return
  }
  func.func @transform_0(%arg0: i32, %arg1: i32) -> (i32, i32) {
    %c0_i32 = arith.constant 0 : i32
    return %arg0, %arg1 : i32, i32
  }
  func.func @transform_1(%arg0: i32, %arg1: i32) -> (i32, i32) {
    %c0_i32 = arith.constant 0 : i32
    %c0_i32_0 = arith.constant 0 : i32
    return %arg1, %c0_i32 : i32, i32
  }
  func.func @transform_2(%arg0: i32, %arg1: i32) -> (i32, i32) {
    %c0_i32 = arith.constant 0 : i32
    %c0_i32_0 = arith.constant 0 : i32
    %c0_i32_1 = arith.constant 0 : i32
    return %c0_i32, %c0_i32_0 : i32, i32
  }
  func.func @transform_3(%arg0: i32, %arg1: i32) -> (i32, i32) {
    %c0_i32 = arith.constant 0 : i32
    %c0_i32_0 = arith.constant 0 : i32
    %c0_i32_1 = arith.constant 0 : i32
    return %c0_i32, %c0_i32_0 : i32, i32
  }
  func.func @transform_4(%arg0: i32, %arg1: i32) -> (i32, i32) {
    %c0_i32 = arith.constant 0 : i32
    %c0_i32_0 = arith.constant 0 : i32
    %c0_i32_1 = arith.constant 0 : i32
    return %c0_i32, %c0_i32_0 : i32, i32
  }
  func.func @transform_5(%arg0: i32, %arg1: i32) -> (i32, i32) {
    %c0_i32 = arith.constant 0 : i32
    %c0_i32_0 = arith.constant 0 : i32
    return %arg0, %c0_i32 : i32, i32
  }
}

</mosaic_0001>

<bundles_post_ra>
// kernel: tpu_custom_call.1
= control target key start
LH: loop header
LB: loop body
LE: loop exit
PB: predicated region body
PF: predicated region fallthrough
CT: control target
= control target key end

     0   :  { %vm26_vm0 = vcmask 261120   ;;  %v641_v4 = vmov 0.0   ;;  %s819_s0 = inlined_call_operand.vmem [shape: f32[128,32], index: 0, kind: input, shape index: {}]   ;;  %s820_s1 = inlined_call_operand.vmem [shape: bf16[32,32], index: 1, kind: input, shape index: {}]   ;;  %s821_s2 = inlined_call_operand.vmem [shape: f32[1,32], index: 2, kind: input, shape index: {}]   ;;  %s822_s3 = inlined_call_operand.vmem [shape: bf16[32,128], index: 3, kind: input, shape index: {}]   ;;  %s823_s4 = inlined_call_operand.vmem [shape: f32[1,128], index: 4, kind: input, shape index: {}]   ;;  %s824_s5 = inlined_call_operand.hbm [shape: f32[128,128], index: 5, kind: output, shape index: {}]  }
   0x1   :  { %v581_v0 = vld [vmem:[%s820_s1] sm:$0xff]   ;;  %v582_v1 = vld [vmem:[%s820_s1 + $0x8] sm:$0xff]   ;;  %29 = vst.msk [vmem:[#allocation2 + $0x10] sm:$0xff] %vm26_vm0, %v641_v4  ;;  %27 = vst.msk [vmem:[#allocation2] sm:$0xff] %vm26_vm0, %v641_v4 }
   0x2   :  { %537 = vmatprep.subr.bf16.mxu0 %v581_v0  ;;  %v59_v2 = vld [vmem:[%s819_s0] sm:$0xff]  ;;  %v60_v3 = vld [vmem:[%s819_s0 + $0x8] sm:$0xff]  ;;  %28 = vst.msk [vmem:[#allocation2 + $0x8] sm:$0xff] %vm26_vm0, %v641_v4  ;;  %30 = vst.msk [vmem:[#allocation2 + $0x18] sm:$0xff] %vm26_vm0, %v641_v4 }
   0x3   :  { %31 = vst.msk [vmem:[#allocation2 + $0x20] sm:$0xff] %vm26_vm0, %v641_v4  ;;  %32 = vst.msk [vmem:[#allocation2 + $0x28] sm:$0xff] %vm26_vm0, %v641_v4  ;;  %538 = vmatpush3.bf16.msra.mxu0 %v581_v0  ;;  %v75_v5 = vpack.c.bf16 %v60_v3, %v59_v2  ;;  %v61_v6 = vld [vmem:[%s819_s0 + $0x10] sm:$0xff]  ;;  %v62_v7 = vld [vmem:[%s819_s0 + $0x18] sm:$0xff] }
   0x4   :  { %33 = vst.msk [vmem:[#allocation2 + $0x30] sm:$0xff] %vm26_vm0, %v641_v4  ;;  %34 = vst.msk [vmem:[#allocation2 + $0x38] sm:$0xff] %vm26_vm0, %v641_v4  ;;  %539 = vmatprep.subr.bf16.mxu0 %v582_v1  ;;  %v63_v8 = vld [vmem:[%s819_s0 + $0x20] sm:$0xff]  ;;  %v64_v9 = vld [vmem:[%s819_s0 + $0x28] sm:$0xff]  ;;  %v76_v10 = vpack.c.bf16 %v62_v7, %v61_v6 }
   0x5   :  { %35 = vst.msk [vmem:[#allocation2 + $0x40] sm:$0xff] %vm26_vm0, %v641_v4  ;;  %36 = vst.msk [vmem:[#allocation2 + $0x48] sm:$0xff] %vm26_vm0, %v641_v4  ;;  %541 = vmatprep.mubr.msk.bf16.mxu0 %vm26_vm0, %v75_v5  ;;  %v77_v11 = vpack.c.bf16 %v64_v9, %v63_v8 }
   0x6   :  { %37 = vst.msk [vmem:[#allocation2 + $0x50] sm:$0xff] %vm26_vm0, %v641_v4  ;;  %38 = vst.msk [vmem:[#allocation2 + $0x58] sm:$0xff] %vm26_vm0, %v641_v4 }
   0x7   :  { %39 = vst.msk [vmem:[#allocation2 + $0x60] sm:$0xff] %vm26_vm0, %v641_v4  ;;  %40 = vst.msk [vmem:[#allocation2 + $0x68] sm:$0xff] %vm26_vm0, %v641_v4  ;;  %540 = vmatpush3.bf16.msra.mxu0 %v582_v1 }
   0x8   :  { %41 = vst.msk [vmem:[#allocation2 + $0x70] sm:$0xff] %vm26_vm0, %v641_v4  ;;  %42 = vst.msk [vmem:[#allocation2 + $0x78] sm:$0xff] %vm26_vm0, %v641_v4 }
   0x9   :  { %10 = vsyncpa [#allocation4], 0  ;;  %v65_v12 = vld [vmem:[%s819_s0 + $0x30] sm:$0xff]  ;;  %v66_v13 = vld [vmem:[%s819_s0 + $0x38] sm:$0xff] }
   0xa   :  { %542 = vmatmul.mubr.msk.bf16.vlgmr.msra.gmra.mrb[0].mxu0 %vm26_vm0, %v76_v10  ;;  %v67_v14 = vld [vmem:[%s819_s0 + $0x40] sm:$0xff]  ;;  %v68_v15 = vld [vmem:[%s819_s0 + $0x48] sm:$0xff]  ;;  %v78_v16 = vpack.c.bf16 %v66_v13, %v65_v12  ;;  %v69_v18 = vld [vmem:[%s819_s0 + $0x50] sm:$0xff] }
   0xb   :  { %545 = vmatprep.mubr.msk.bf16.mxu0 %vm26_vm0, %v77_v11  ;;  %v79_v17 = vpack.c.bf16 %v68_v15, %v67_v14  ;;  %v70_v19 = vld [vmem:[%s819_s0 + $0x58] sm:$0xff]  ;;  %v71_v20 = vld [vmem:[%s819_s0 + $0x60] sm:$0xff]  ;;  %v72_v21 = vld [vmem:[%s819_s0 + $0x68] sm:$0xff] }
   0xc   :  { %v80_v22 = vpack.c.bf16 %v70_v19, %v69_v18  ;;  %v81_v23 = vpack.c.bf16 %v72_v21, %v71_v20  ;;  %v73_v24 = vld [vmem:[%s819_s0 + $0x70] sm:$0xff]  ;;  %v74_v25 = vld [vmem:[%s819_s0 + $0x78] sm:$0xff]  ;;  %v583_v27 = vld [vmem:[%s822_s3] sm:$0xff]  }
   0xd   :  { %v82_v26 = vpack.c.bf16 %v74_v25, %v73_v24  ;;  %557 = vmatprep.subr.bf16.mxu1 %v583_v27  ;;  %v584_v28 = vld [vmem:[%s822_s3 + $0x8] sm:$0xff]   ;;  %v45_v29 = vld [vmem:[#allocation2 + $0x10] sm:$0xff]  ;;  %v43_v30 = vld [vmem:[#allocation2] sm:$0xff] }
   0xe   :  { %558 = vmatpush3.bf16.msra.mxu1 %v583_v27  ;;  %v46_v32 = vld [vmem:[#allocation2 + $0x18] sm:$0xff]  ;;  %v44_v35 = vld [vmem:[#allocation2 + $0x8] sm:$0xff]  ;;  %v49_v41 = vld [vmem:[#allocation2 + $0x30] sm:$0xff] }
   0xf   :  { %559 = vmatprep.subr.bf16.mxu1 %v584_v28  ;;  %v47_v42 = vld [vmem:[#allocation2 + $0x20] sm:$0xff]  ;;  %v50_v44 = vld [vmem:[#allocation2 + $0x38] sm:$0xff]  ;;  %v48_v47 = vld [vmem:[#allocation2 + $0x28] sm:$0xff] }
  0x10   :  { %v766_v48 = vld [vmem:[%s821_s2] ss:$0 sm:$0xff]  ;;  %v53_v61 = vld [vmem:[#allocation2 + $0x50] sm:$0xff]  ;;  %v54_v1 = vld [vmem:[#allocation2 + $0x58] sm:$0xff] }
  0x11   :  { %v51_v63 = vld [vmem:[#allocation2 + $0x40] sm:$0xff]  ;;  %v52_v4 = vld [vmem:[#allocation2 + $0x48] sm:$0xff] }
  0x12   :  { %546 = vmatmul.mubr.msk.bf16.gmra.mrb[4].mxu0 %vm26_vm0, %v78_v16  ;;  %560 = vmatpush3.bf16.msra.mxu1 %v584_v28  ;;  %v55_v19 = vld [vmem:[#allocation2 + $0x60] sm:$0xff] }
  0x13   :  { %549 = vmatprep.mubr.msk.bf16.mxu0 %vm26_vm0, %v79_v17  ;;  %v57_v17 = vld [vmem:[#allocation2 + $0x70] sm:$0xff] }
  0x1a   :  { %550 = vmatmul.mubr.msk.bf16.gmra.mrb[8].mxu0 %vm26_vm0, %v80_v22  ;;  %v58_v22 = vld [vmem:[#allocation2 + $0x78] sm:$0xff] }
  0x1b   :  { %553 = vmatprep.mubr.msk.bf16.mxu0 %vm26_vm0, %v81_v23 }
  0x22   :  { %554 = vmatmul.mubr.msk.bf16.gmra.mrb[12].mxu0 %vm26_vm0, %v82_v26  ;;  %v56_v26 = vld [vmem:[#allocation2 + $0x68] sm:$0xff] }
  0xdd   :  { %v543_v31 = vpop.f32.mrb[0].mxu0 }
  0xde   :  { %v223_v33 = vadd.f32 %v543_v31, %v45_v29  ;;  %v158_v34 = vpop.f32.mrb[1].mxu0 }
  0xdf   :  { %v221_v36 = vadd.f32 %v158_v34, %v43_v30  ;;  %v544_v37 = vpop.f32.mrb[2].mxu0 }
  0xe0   :  { %239 = vst.msk [vmem:[#allocation2 + $0x10] sm:$0xff] %vm26_vm0, %v223_v33  ;;  %v224_v38 = vadd.f32 %v544_v37, %v46_v32  ;;  %v161_v39 = vpop.f32.mrb[3].mxu0 }
  0xe1   :  { %237 = vst.msk [vmem:[#allocation2] sm:$0xff] %vm26_vm0, %v221_v36  ;;  %v222_v40 = vadd.f32 %v161_v39, %v44_v35 }
  0xe2   :  { %240 = vst.msk [vmem:[#allocation2 + $0x18] sm:$0xff] %vm26_vm0, %v224_v38 }
  0xe3   :  { %238 = vst.msk [vmem:[#allocation2 + $0x8] sm:$0xff] %vm26_vm0, %v222_v40 }
  0xe5   :  { %v547_v43 = vpop.f32.mrb[4].mxu0 }
  0xe6   :  { %v227_v45 = vadd.f32 %v547_v43, %v49_v41  ;;  %v174_v46 = vpop.f32.mrb[5].mxu0 }
  0xe7   :  { %v225_v49 = vadd.f32 %v174_v46, %v47_v42  ;;  %v548_v50 = vpop.f32.mrb[6].mxu0  ;;  %v258_v51 = vld [vmem:[#allocation2 + $0x10] sm:$0xff] }
  0xe8   :  { %243 = vst.msk [vmem:[#allocation2 + $0x30] sm:$0xff] %vm26_vm0, %v227_v45  ;;  %v228_v52 = vadd.f32 %v548_v50, %v50_v44  ;;  %v177_v53 = vpop.f32.mrb[7].mxu0  ;;  %v256_v54 = vld [vmem:[#allocation2] sm:$0xff]  ;;  %v281_v59 = vadd.f32 %v766_v48, %v258_v51 }
  0xe9   :  { %241 = vst.msk [vmem:[#allocation2 + $0x20] sm:$0xff] %vm26_vm0, %v225_v49  ;;  %v226_v55 = vadd.f32 %v177_v53, %v48_v47  ;;  %v279_v56 = vadd.f32 %v766_v48, %v256_v54  ;;  %v259_v57 = vld [vmem:[#allocation2 + $0x18] sm:$0xff] }
  0xea   :  { %244 = vst.msk [vmem:[#allocation2 + $0x38] sm:$0xff] %vm26_vm0, %v228_v52  ;;  %v257_v58 = vld [vmem:[#allocation2 + $0x8] sm:$0xff]  ;;  %v282_v60 = vadd.f32 %v766_v48, %v259_v57 }
  0xeb   :  { %242 = vst.msk [vmem:[#allocation2 + $0x28] sm:$0xff] %vm26_vm0, %v226_v55  ;;  %v280_v62 = vadd.f32 %v766_v48, %v257_v58  ;;  %585 = vtanh.f32 %v279_v56 }
  0xec   :  { %587 = vtanh.f32 %v282_v60 }
  0xed   :  { %v551_v0 = vpop.f32.mrb[8].mxu0  ;;  %589 = vtanh.f32 %v280_v62 }
  0xee   :  { %v231_v2 = vadd.f32 %v551_v0, %v53_v61  ;;  %v190_v3 = vpop.f32.mrb[9].mxu0  ;;  %591 = vtanh.f32 %v281_v59 }
  0xef   :  { %v229_v5 = vadd.f32 %v190_v3, %v51_v63  ;;  %v552_v6 = vpop.f32.mrb[10].mxu0  ;;  %v262_v7 = vld [vmem:[#allocation2 + $0x30] sm:$0xff] }
  0xf0   :  { %247 = vst.msk [vmem:[#allocation2 + $0x50] sm:$0xff] %vm26_vm0, %v231_v2  ;;  %v232_v8 = vadd.f32 %v552_v6, %v54_v1  ;;  %v193_v9 = vpop.f32.mrb[11].mxu0  ;;  %v260_v10 = vld [vmem:[#allocation2 + $0x20] sm:$0xff]  ;;  %v285_v15 = vadd.f32 %v766_v48, %v262_v7 }
  0xf1   :  { %245 = vst.msk [vmem:[#allocation2 + $0x40] sm:$0xff] %vm26_vm0, %v229_v5  ;;  %v230_v11 = vadd.f32 %v193_v9, %v52_v4  ;;  %v283_v12 = vadd.f32 %v766_v48, %v260_v10  ;;  %v263_v13 = vld [vmem:[#allocation2 + $0x38] sm:$0xff]  ;;  %v506_v6 = vld [vmem:[%s823_s4] ss:$0 sm:$0xff]  ;;  %s642_s4 = smov [#allocation3]  }
  0xf2   :  { %248 = vst.msk [vmem:[#allocation2 + $0x58] sm:$0xff] %vm26_vm0, %v232_v8  ;;  %v261_v14 = vld [vmem:[#allocation2 + $0x28] sm:$0xff]  ;;  %v286_v16 = vadd.f32 %v766_v48, %v263_v13  ;;  %s484_s7 = sshll.u32 %s642_s4, 4  ;;  %s485_s7 = int_to_ptr.vmem [resolvable:$true] %s484_s7 }
  0xf3   :  { %246 = vst.msk [vmem:[#allocation2 + $0x48] sm:$0xff] %vm26_vm0, %v230_v11  ;;  %v284_v18 = vadd.f32 %v766_v48, %v261_v14  ;;  %593 = vtanh.f32 %v283_v12  ;;  %s617_s8 = scalar_lea.vmem %s485_s7, 2048  ;;  %p622_p1 = scmp.lt.s32.totalorder %s485_s7, %s485_s7 }
  0xf4   :  { %595 = vtanh.f32 %v286_v16  ;;  %p618_p0 = scmp.ne.s32.totalorder %s485_s7, %s617_s8  ;;  %p623_p2 = scmp.lt.s32.totalorder %s617_s8, %s617_s8 }
  0xf5   :  { %v586_v20 = vpop.eup %585  ;;  %v555_v21 = vpop.f32.mrb[12].mxu0  ;;  %597 = vtanh.f32 %v284_v18 }
  0xf6   :  { %v588_v23 = vpop.eup %587  ;;  %v235_v24 = vadd.f32 %v555_v21, %v57_v17  ;;  %v206_v25 = vpop.f32.mrb[13].mxu0  ;;  %599 = vtanh.f32 %v285_v15  ;;  %p624_p3 = por %p623_p2, %p622_p1 }
  0xf7   :  { %v590_v27 = vpop.eup %589  ;;  %v233_v28 = vadd.f32 %v206_v25, %v55_v19  ;;  %v556_v29 = vpop.f32.mrb[14].mxu0  ;;  %v266_v30 = vld [vmem:[#allocation2 + $0x50] sm:$0xff] }
  0xf8   :  { %v592_v31 = vpop.eup %591  ;;  %251 = vst.msk [vmem:[#allocation2 + $0x70] sm:$0xff] %vm26_vm0, %v235_v24  ;;  %v236_v32 = vadd.f32 %v556_v29, %v58_v22  ;;  %v209_v33 = vpop.f32.mrb[15].mxu0  ;;  %v311_v34 = vpack.c.bf16 %v590_v27, %v586_v20  ;;  %v264_v35 = vld [vmem:[#allocation2 + $0x40] sm:$0xff]  ;;  %v289_v41 = vadd.f32 %v766_v48, %v266_v30  ;;  %p625_p4 = pnand %p624_p3, %p618_p0 }
  0xf9   :  { %249 = vst.msk [vmem:[#allocation2 + $0x60] sm:$0xff] %vm26_vm0, %v233_v28  ;;  %v234_v36 = vadd.f32 %v209_v33, %v56_v26  ;;  %v312_v37 = vpack.c.bf16 %v588_v23, %v592_v31  ;;  %v287_v38 = vadd.f32 %v766_v48, %v264_v35  ;;  %v267_v39 = vld [vmem:[#allocation2 + $0x58] sm:$0xff] }
  0xfa   :  { %252 = vst.msk [vmem:[#allocation2 + $0x78] sm:$0xff] %vm26_vm0, %v236_v32  ;;  %561 = vmatprep.mubr.msk.bf16.mxu1 %vm26_vm0, %v311_v34  ;;  %v265_v40 = vld [vmem:[#allocation2 + $0x48] sm:$0xff]  ;;  %v290_v42 = vadd.f32 %v766_v48, %v267_v39 }
  0xfb   :  { %250 = vst.msk [vmem:[#allocation2 + $0x68] sm:$0xff] %vm26_vm0, %v234_v36  ;;  %562 = vmatmul.mubr.msk.bf16.vlgmr.msra.gmra.mrb[0].mxu1 %vm26_vm0, %v312_v37  ;;  %v288_v43 = vadd.f32 %v766_v48, %v265_v40  ;;  %601 = vtanh.f32 %v287_v38 }
  0xfc   :  { %603 = vtanh.f32 %v290_v42 }
  0xfd   :  { %v594_v44 = vpop.eup %593  ;;  %605 = vtanh.f32 %v288_v43 }
  0xfe   :  { %v596_v45 = vpop.eup %595  ;;  %607 = vtanh.f32 %v289_v41 }
  0xff   :  { %v598_v46 = vpop.eup %597  ;;  %v270_v47 = vld [vmem:[#allocation2 + $0x70] sm:$0xff] }
 0x100   :  { %v600_v49 = vpop.eup %599  ;;  %v313_v50 = vpack.c.bf16 %v598_v46, %v594_v44  ;;  %v268_v51 = vld [vmem:[#allocation2 + $0x60] sm:$0xff]  ;;  %v293_v56 = vadd.f32 %v766_v48, %v270_v47 }
 0x101   :  { %v314_v52 = vpack.c.bf16 %v596_v45, %v600_v49  ;;  %v291_v53 = vadd.f32 %v766_v48, %v268_v51  ;;  %v271_v54 = vld [vmem:[#allocation2 + $0x78] sm:$0xff] }
 0x102   :  { %565 = vmatprep.mubr.msk.bf16.mxu1 %vm26_vm0, %v313_v50  ;;  %v269_v55 = vld [vmem:[#allocation2 + $0x68] sm:$0xff]  ;;  %v294_v57 = vadd.f32 %v766_v48, %v271_v54 }
 0x103   :  { %566 = vmatmul.mubr.msk.bf16.gmra.mrb[4].mxu1 %vm26_vm0, %v314_v52  ;;  %v292_v58 = vadd.f32 %v766_v48, %v269_v55  ;;  %609 = vtanh.f32 %v291_v53 }
 0x104   :  { %611 = vtanh.f32 %v294_v57 }
 0x105   :  { %v602_v59 = vpop.eup %601  ;;  %613 = vtanh.f32 %v292_v58 }
 0x106   :  { %v604_v60 = vpop.eup %603  ;;  %615 = vtanh.f32 %v293_v56 }
 0x107   :  { %v606_v61 = vpop.eup %605 }
 0x108   :  { %v608_v62 = vpop.eup %607  ;;  %v315_v63 = vpack.c.bf16 %v606_v61, %v602_v59 }
 0x109   :  { %v316_v0 = vpack.c.bf16 %v604_v60, %v608_v62 }
 0x10a   :  { %569 = vmatprep.mubr.msk.bf16.mxu1 %vm26_vm0, %v315_v63 }
 0x10b   :  { %570 = vmatmul.mubr.msk.bf16.gmra.mrb[8].mxu1 %vm26_vm0, %v316_v0 }
 0x10d   :  { %v610_v1 = vpop.eup %609 }
 0x10e   :  { %v612_v2 = vpop.eup %611 }
 0x10f   :  { %v614_v3 = vpop.eup %613 }
 0x110   :  { %v616_v4 = vpop.eup %615  ;;  %v317_v5 = vpack.c.bf16 %v614_v3, %v610_v1 }
 0x111   :  { %v318_v48 = vpack.c.bf16 %v612_v2, %v616_v4 }
 0x112   :  { %573 = vmatprep.mubr.msk.bf16.mxu1 %vm26_vm0, %v317_v5 }
 0x113   :  { %574 = vmatmul.mubr.msk.bf16.gmra.mrb[12].mxu1 %vm26_vm0, %v318_v48 }
 0x1ce   :  { %v563_v7 = vpop.f32.mrb[0].mxu1 }
 0x1cf   :  { %v409_v8 = vadd.f32 %v563_v7, %v506_v6  ;;  %v400_v9 = vpop.f32.mrb[1].mxu1 }
 0x1d0   :  { %v401_v10 = vadd.f32 %v506_v6, %v400_v9  ;;  %v564_v11 = vpop.f32.mrb[2].mxu1 }
 0x1d1   :  { %465 = vst [vmem:[#allocation3 + $0x10] sm:$0xff] %v409_v8  ;;  %v412_v12 = vadd.f32 %v564_v11, %v506_v6  ;;  %v403_v13 = vpop.f32.mrb[3].mxu1 }
 0x1d2   :  { %463 = vst [vmem:[#allocation3] sm:$0xff] %v401_v10  ;;  %v404_v14 = vadd.f32 %v506_v6, %v403_v13 }
 0x1d3   :  { %466 = vst [vmem:[#allocation3 + $0x18] sm:$0xff] %v412_v12 }
 0x1d4   :  { %464 = vst [vmem:[#allocation3 + $0x8] sm:$0xff] %v404_v14 }
 0x1d6   :  { %v567_v15 = vpop.f32.mrb[4].mxu1 }
 0x1d7   :  { %v425_v16 = vadd.f32 %v567_v15, %v506_v6  ;;  %v416_v17 = vpop.f32.mrb[5].mxu1 }
 0x1d8   :  { %v417_v18 = vadd.f32 %v506_v6, %v416_v17  ;;  %v568_v19 = vpop.f32.mrb[6].mxu1 }
 0x1d9   :  { %469 = vst [vmem:[#allocation3 + $0x30] sm:$0xff] %v425_v16  ;;  %v428_v20 = vadd.f32 %v568_v19, %v506_v6  ;;  %v419_v21 = vpop.f32.mrb[7].mxu1 }
 0x1da   :  { %467 = vst [vmem:[#allocation3 + $0x20] sm:$0xff] %v417_v18  ;;  %v420_v22 = vadd.f32 %v506_v6, %v419_v21 }
 0x1db   :  { %470 = vst [vmem:[#allocation3 + $0x38] sm:$0xff] %v428_v20 }
 0x1dc   :  { %468 = vst [vmem:[#allocation3 + $0x28] sm:$0xff] %v420_v22 }
 0x1de   :  { %v571_v23 = vpop.f32.mrb[8].mxu1 }
 0x1df   :  { %v441_v24 = vadd.f32 %v571_v23, %v506_v6  ;;  %v432_v25 = vpop.f32.mrb[9].mxu1 }
 0x1e0   :  { %v433_v26 = vadd.f32 %v506_v6, %v432_v25  ;;  %v572_v27 = vpop.f32.mrb[10].mxu1 }
 0x1e1   :  { %473 = vst [vmem:[#allocation3 + $0x50] sm:$0xff] %v441_v24  ;;  %v444_v28 = vadd.f32 %v572_v27, %v506_v6  ;;  %v435_v29 = vpop.f32.mrb[11].mxu1 }
 0x1e2   :  { %471 = vst [vmem:[#allocation3 + $0x40] sm:$0xff] %v433_v26  ;;  %v436_v30 = vadd.f32 %v506_v6, %v435_v29 }
 0x1e3   :  { %474 = vst [vmem:[#allocation3 + $0x58] sm:$0xff] %v444_v28 }
 0x1e4   :  { %472 = vst [vmem:[#allocation3 + $0x48] sm:$0xff] %v436_v30 }
 0x1e6   :  { %v575_v31 = vpop.f32.mrb[12].mxu1 }
 0x1e7   :  { %v457_v32 = vadd.f32 %v575_v31, %v506_v6  ;;  %v448_v33 = vpop.f32.mrb[13].mxu1 }
 0x1e8   :  { %v449_v34 = vadd.f32 %v506_v6, %v448_v33  ;;  %v576_v35 = vpop.f32.mrb[14].mxu1 }
 0x1e9   :  { %477 = vst [vmem:[#allocation3 + $0x70] sm:$0xff] %v457_v32  ;;  %v460_v36 = vadd.f32 %v576_v35, %v506_v6  ;;  %v451_v37 = vpop.f32.mrb[15].mxu1 }
 0x1ea   :  { %475 = vst [vmem:[#allocation3 + $0x60] sm:$0xff] %v449_v34  ;;  %v452_v38 = vadd.f32 %v506_v6, %v451_v37 }
 0x1eb   :  { %478 = vst [vmem:[#allocation3 + $0x78] sm:$0xff] %v460_v36 }
 0x1ec   :  { %476 = vst [vmem:[#allocation3 + $0x68] sm:$0xff] %v452_v38 }
 0x1ed   :  { %628 = shalt.err (!%p625_p4)
}
 0x1ee   :  { %s629_s11 = scalar_lea.hbm %s824_s5, 2048 }
 0x1ef   :  { %p630_p5 = scmp.ne.s32.totalorder %s824_s5, %s629_s11  ;;  %p633_p6 = scmp.lt.u32.totalorder %s629_s11, %s824_s5 }
 0x1f1   :  { %p635_p7 = pnand %p633_p6, %p630_p5 }
 0x1f3   :  { %638 = shalt.err (!%p635_p7)
}
 0x1f4   :  { %s643_s16 = smov 128   ;;  %s644_s17 = smov 8  }
 0x1f5   :  { %490 = dma.vmem_to_hbm [thread:$0]  %s485_s7, 2048, %s824_s5, [#allocation4], %s643_s16, %s643_s16, %s644_s17  }
 0x1f6   :  { %639 = dma.done.wait [#allocation4], 2048  }
 0x1f7   :  { %640 = vsyncadd [#allocation4], 4294965248 }
 0x1f8   :  { %494 = vsyncpa [#allocation4], 1 }

</bundles_post_ra>
